<compile_context>
chip_gen: v7x
topology: tpu7x:2x2x1
jax: 0.10.0
libtpu: 0.0.40
codegen_flags: <defaults>
</compile_context>

<pallas_src>
import math

import jax
import jax.numpy as jnp
from jax.experimental import pallas as pl
from jax.experimental.pallas import tpu as pltpu


def _round_up(x: int, m: int) -> int:
    return ((x + m - 1) // m) * m


def make_fixed_embedding_table(c_in: int, d_model: int) -> jnp.ndarray:
    """Deterministic sinusoidal table, identical to the PyTorch __init__."""
    position = jnp.arange(c_in, dtype=jnp.float32)[:, None]                    # (c_in, 1)
    div_term = jnp.exp(
        jnp.arange(0, d_model, 2, dtype=jnp.float32) * -(math.log(10000.0) / d_model)
    )
    w = jnp.zeros((c_in, d_model), dtype=jnp.float32)
    w = w.at[:, 0::2].set(jnp.sin(position * div_term))
    w = w.at[:, 1::2].set(jnp.cos(position * div_term[: d_model // 2]))        # odd-d_model safe
    return w


def _embed_kernel(idx_ref, w_ref, out_ref):
    # idx_ref: (block_rows, 1) int32    -- token indices for this row tile
    # w_ref:   (c_in, d_model) f32      -- resident constant table
    # out_ref: (block_rows, d_model)    -- output tile, written exactly once
    ids = idx_ref[...]                                       # (block_rows, 1), sublane-oriented
    rows = ids.shape[0]
    c_in = w_ref.shape[0]

    cols = jax.lax.broadcasted_iota(jnp.int32, (rows, c_in), 1)
    onehot = (ids == cols).astype(jnp.float32)               # single compare + single cast

    # One MXU matmul per tile.  Precision.HIGHEST keeps full f32 passes so the result
    # matches jnp.take(w, x).  Out-of-range / negative ids give a zero output row
    # (PyTorch nn.Embedding would raise instead).
    out = jnp.dot(onehot, w_ref[...],
                  preferred_element_type=jnp.float32,
                  precision=jax.lax.Precision.HIGHEST)
    out_ref[...] = out.astype(out_ref.dtype)


def _choose_block_rows(n_rows: int, d_model: int, max_rows: int,
                       table_resident_bytes: int) -> int:
    # VMEM for the pipelined blocks: output tile (lanes padded to >=128) and index tile
    # (1 lane padded to 128), each double-buffered.  Budget kept well inside the v7x
    # 32 MiB scoped-VMEM default (v5e/v6e have more headroom).
    budget = 12 << 20
    avail = max(budget - table_resident_bytes, 1 << 20)
    bytes_per_row = 2 * (max(d_model, 128) * 4 + 128 * 4)
    cap = max(8, (avail // bytes_per_row) // 8 * 8)

    br = min(max_rows, cap)
    if n_rows >= 16:
        # Guarantee grid >= 2 so the single grid axis shards across both v7x TensorCores.
        br = min(br, _round_up(pl.cdiv(n_rows, 2), 8))
    br = max(8, (br // 8) * 8)
    return min(br, _round_up(n_rows, 8))


def fixed_embedding(x: jnp.ndarray, w: jnp.ndarray, *,
                    max_rows_per_tile: int = 1024,
                    out_dtype=jnp.float32) -> jnp.ndarray:
    """x: (B, L) integer indices -> (B, L, d_model) embeddings (out_dtype, default f32)."""
    B, L = x.shape
    c_in, d_model = w.shape
    w = w.astype(jnp.float32)
    n_rows = B * L

    # Resident-table VMEM footprint (lanes pad to >=128 in VMEM).
    table_bytes = c_in * max(d_model, 128) * 4
    single_buffer_table = table_bytes > (2 << 20)     # constant index_map -> 2nd buffer is waste
    table_resident = table_bytes * (1 if single_buffer_table else 2)
    # TODO(synk): when table_resident approaches the VMEM budget (large c_in), switch to a
    # scalar-prefetch DMA-gather path instead of the one-hot matmul.

    block_rows = _choose_block_rows(n_rows, d_model, max_rows_per_tile, table_resident)
    grid = pl.cdiv(n_rows, block_rows)                # ragged tail handled by boundary masking

    idx = x.reshape(n_rows, 1).astype(jnp.int32)

    table_kwargs = {"pipeline_mode": pl.Buffered(1)} if single_buffer_table else {}
    table_spec = pl.BlockSpec((c_in, d_model), lambda i: (0, 0), **table_kwargs)

    compiler_kwargs = dict(dimension_semantics=("parallel",))
    needed = table_resident + 2 * block_rows * (max(d_model, 128) * 4 + 512) + (2 << 20)
    if needed > (28 << 20):
        # Above the scoped-VMEM default -> raise the limit explicitly (stays < v7x physical).
        compiler_kwargs["vmem_limit_bytes"] = int(min(needed, 60 << 20))

    out = pl.pallas_call(
        _embed_kernel,
        out_shape=jax.ShapeDtypeStruct((n_rows, d_model), out_dtype),
        grid_spec=pltpu.PrefetchScalarGridSpec(
            num_scalar_prefetch=0,
            grid=(grid,),
            in_specs=[
                pl.BlockSpec((block_rows, 1), lambda i: (i, 0)),        # indices
                table_spec,                                             # resident table
            ],
            out_specs=pl.BlockSpec((block_rows, d_model), lambda i: (i, 0)),
        ),
        compiler_params=pltpu.CompilerParams(**compiler_kwargs),
    )(idx, w)

    # Leading-dim split only: (B*L, d_model) -> (B, L, d_model).  For TPU tiled layouts
    # this is a bitcast whenever L % 8 == 0; otherwise XLA inserts one small copy.
    return out.reshape(B, L, d_model)


if __name__ == "__main__":
    c_in, d_model = 32, 32          # e.g. a calendar-feature vocabulary
    B, L = 2, 8

    key = jax.random.PRNGKey(0)
    x = jax.random.randint(key, (B, L), minval=0, maxval=c_in, dtype=jnp.int32)
    w = make_fixed_embedding_table(c_in, d_model)

    out = jax.block_until_ready(fixed_embedding(x, w))
    ref = jnp.take(w, x, axis=0)
    assert out.shape == (B, L, d_model)
    assert out.dtype == jnp.float32
    assert jnp.allclose(out, ref, atol=1e-6, rtol=0.0)

    # Ragged total rows (B*L not a multiple of the row tile) -> boundary-masked block.
    x2 = jax.random.randint(jax.random.PRNGKey(1), (3, 7), 0, c_in, dtype=jnp.int32)
    out2 = jax.block_until_ready(fixed_embedding(x2, w))
    assert jnp.allclose(out2, jnp.take(w, x2, axis=0), atol=1e-6, rtol=0.0)

    # Many grid steps with a non-dividing tail (forces the masked boundary path).
    x3 = jax.random.randint(jax.random.PRNGKey(2), (2, 21), 0, c_in, dtype=jnp.int32)
    out3 = jax.block_until_ready(fixed_embedding(x3, w, max_rows_per_tile=8))
    assert jnp.allclose(out3, jnp.take(w, x3, axis=0), atol=1e-6, rtol=0.0)

    print("KERNEL_OK")
</pallas_src>

<mosaic_0001>
module attributes {stable_mosaic.version = 11 : i64} {
  func.func @_embed_kernel(%arg0: i32, %arg1: memref<8x1xi32, #tpu.memory_space<vmem>>, %arg2: memref<32x32xf32, #tpu.memory_space<vmem>>, %arg3: memref<8x32xf32, #tpu.memory_space<vmem>>) attributes {dimension_semantics = [#tpu.dimension_semantics<parallel>], iteration_bounds = array<i64: 2>, scalar_prefetch = 0 : i64, scratch_operands = 0 : i64, tpu.core_type = #tpu.core_type<tc>, window_params = [{transform_indices = @transform_0, window_bounds = array<i64: 8, 1>}, {pipeline_mode = #tpu.pipeline_mode<synchronous>, transform_indices = @transform_1, window_bounds = array<i64: 32, 32>}, {transform_indices = @transform_2, window_bounds = array<i64: 8, 32>}]} {
    %c0 = arith.constant 0 : index
    %c0_0 = arith.constant 0 : index
    %0 = vector.load %arg1[%c0, %c0_0] : memref<8x1xi32, #tpu.memory_space<vmem>>, vector<8x1xi32>
    %1 = tpu.iota {dimensions = array<i32: 1>} : vector<8x32xi32>
    %2 = vector.broadcast %0 : vector<8x1xi32> to vector<8x32xi32>
    %3 = arith.cmpi eq, %2, %1 : vector<8x32xi32>
    %4 = arith.extui %3 : vector<8x32xi1> to vector<8x32xi32>
    %5 = arith.sitofp %4 : vector<8x32xi32> to vector<8x32xf32>
    %c0_1 = arith.constant 0 : index
    %c0_2 = arith.constant 0 : index
    %6 = vector.load %arg2[%c0_1, %c0_2] : memref<32x32xf32, #tpu.memory_space<vmem>>, vector<32x32xf32>
    %cst = arith.constant dense<0.000000e+00> : vector<8x32xf32>
    %7 = tpu.matmul %5, %6, %cst {dimension_numbers = #tpu.dot_dimension_numbers<[1], [0], [0], [1], [0, 0, 1, 1], [], []>, precision = #tpu.contract_precision<fp32>} : vector<8x32xf32>, vector<32x32xf32>, vector<8x32xf32> -> vector<8x32xf32>
    %c0_3 = arith.constant 0 : index
    %c0_4 = arith.constant 0 : index
    %8 = vector.load %arg3[%c0_3, %c0_4] : memref<8x32xf32, #tpu.memory_space<vmem>>, vector<8x32xf32>
    tpu.vector_store %arg3[%c0_3, %c0_4], %7 {strides = array<i32>} : memref<8x32xf32, #tpu.memory_space<vmem>>, vector<8x32xf32>,
    return
  }
  func.func @transform_0(%arg0: i32) -> (i32, i32) {
    %c0_i32 = arith.constant 0 : i32
    %c0_i32_0 = arith.constant 0 : i32
    return %arg0, %c0_i32 : i32, i32
  }
  func.func @transform_1(%arg0: i32) -> (i32, i32) {
    %c0_i32 = arith.constant 0 : i32
    %c0_i32_0 = arith.constant 0 : i32
    %c0_i32_1 = arith.constant 0 : i32
    return %c0_i32, %c0_i32_0 : i32, i32
  }
  func.func @transform_2(%arg0: i32) -> (i32, i32) {
    %c0_i32 = arith.constant 0 : i32
    %c0_i32_0 = arith.constant 0 : i32
    return %arg0, %c0_i32 : i32, i32
  }
}

</mosaic_0001>

<bundles_post_ra>
// kernel: tpu_custom_call.1
= control target key start
LH: loop header
LB: loop body
LE: loop exit
PB: predicated region body
PF: predicated region fallthrough
CT: control target
= control target key end

     0   :  { %7 = vsyncpa [#allocation3], 0  ;;  %s1248_s0 = inlined_call_operand.vmem [shape: s32[16,1], index: 0, kind: input, shape index: {}]   ;;  %s1249_s1 = inlined_call_operand.hbm [shape: f32[32,32], index: 1, kind: input, shape index: {}]   ;;  %s1250_s2 = inlined_call_operand.hbm [shape: f32[16,32], index: 2, kind: output, shape index: {}]  }
   0x1   :  { %8 = vsyncpa [#allocation4], 0 }
   0x2   :  { %10 = vsyncpa [#allocation4 + $0x1], 0  ;;  %s1075_s9 = smov 0   ;;  %s1077_s10 = smov 0  }
   0x3   :  { %s1079_s11 = smov 0   ;;  %s1081_s12 = smov 0  }
   0x4 LB: > { %s1096_s13 = sadd.s32 4294967295, %s1050_s12   ;;  %s742_s14 = sadd.s32 4294967294, %s1050_s12   ;;  %s1050_s12 = sphi %s1081_s12, %s1266_s12   ;;  %s1046_s11 = sphi %s1079_s11, %s1265_s11   ;;  %s1042_s10 = sphi %s1077_s10, %s1264_s10   ;;  %s1038_s9 = sphi %s1075_s9, %s1263_s9  }
   0x5   : > { %s1100_s15 = sadd.s32 1, %s1050_s12   ;;  %s70_s16 = sadd.s32 1, %s1046_s11 }
   0x6   : > { %s67_s17 = ssub.s32 %s1050_s12, %s1100_s15  ;;  %p80_p0 = scmp.ne.s32.totalorder %s1046_s11, %s1042_s10 }
   0x7   : > { %p68_p1 = scmp.eq.s32.totalorder %s67_s17, 0  ;;  %p81_p2 = scmp.eq.s32.totalorder %s1096_s13, 1 }
   0x8   : > { %p86_p3 = scmp.ne.s32.totalorder %s1042_s10, %s1038_s9  ;;  %p87_p4 = scmp.eq.s32.totalorder %s742_s14, 1 }
   0x9   : > { %s1111_s18 = scalar_select %p68_p1, %s1046_s11, %s70_s16  }
   0xa   : > { %p1113_p5 = por %p81_p2, %p80_p0  ;;  %p1117_p6 = por %p87_p4, %p86_p3 }
   0xb   : > { %p743_p7 = scmp.ge.s32.totalorder %s1050_s12, 1  ;;  %p94_p8 = scmp.lt.s32.totalorder %s1050_s12, 3 }
   0xc   : > { %s1254_s19 = scalar_select %p1113_p5, 1, 0 }
   0xd   : > { %s1255_s20 = scalar_select %p1117_p6, 1, 0 }
   0xe   : > { %p1251_p9 = scmp.eq.s32.totalorder %s1096_s13, 0  ;;  %p1124_p10 = pnand %p743_p7, %p94_p8 }
   0xf   : > { %s1052_s22 = smov [#allocation2]   ;;  %s956_s27 = scalar_lea.hbm %s1249_s1, 512 }
  0x10   : > { %s1256_s21 = scalar_select %p1124_p10, 1, 0 }
  0x11   : > { %s106_s23 = sshll.u32 %s1052_s22, 4  ;;  %p905_p11 = pneg %p1124_p10  ;;  %s107_s23 = int_to_ptr.vmem [resolvable:$true] %s106_s23 }
  0x12   : > { %p957_p13 = scmp.ne.s32.totalorder %s1249_s1, %s956_s27  ;;  %p963_p3 = scmp.lt.u32.totalorder %s956_s27, %s1249_s1 }
  0x13   : > { %p1132_p12 = pnand %p1251_p9, %p905_p11 }
  0x15   : > { %p958_p0 = pneg %p1132_p12 }
  0x17   : > { %p959_p1 = pnand %p958_p0, %p957_p13 }
  0x19   : > { %p960_p2 = pneg %p959_p1 }
  0x1b   : > { %p965_p4 = pnand %p963_p3, %p960_p2 }
  0x1d   : > { %968 = shalt.err (!%p965_p4)
}
  0x1e   : > { %s969_s4 = scalar_lea.vmem %s107_s23, 512  ;;  %p977_p9 = scmp.lt.s32.totalorder %s107_s23, %s107_s23 }
  0x1f   : > { %p970_p7 = scmp.ne.s32.totalorder %s107_s23, %s969_s4  ;;  %p978_p6 = scmp.lt.s32.totalorder %s969_s4, %s969_s4 }
  0x21   : > { %p972_p8 = pnand %p970_p7, %p958_p0  ;;  %p979_p5 = por %p978_p6, %p977_p9 }
  0x23   : > { %p973_p11 = pneg %p972_p8 }
  0x25   : > { %p980_p10 = pnand %p979_p5, %p973_p11 }
  0x27   : > { %983 = shalt.err (!%p980_p10)
}
  0x28   : > { %s1053_s5 = smov 128   ;;  %s1054_s6 = smov 8  }
  0x29   : > { %908 = dma.hbm_to_vmem [thread:$0]  (!%p1132_p12), %s1249_s1, 512, %s107_s23, [#allocation3], %s1053_s5, %s1053_s5, %s1054_s6  }
  0x2a   : > { %p1258_p13 = scmp.ne.s32.totalorder %s1256_s21, 0 }
  0x2b   : > { %p1259_p1 = scmp.eq.s32.totalorder (!%p1258_p13), %s1096_s13, 0 }
  0x2c   : > { %129 = sbr.rel (%p1258_p13) target bundleno = 442 (0x1ba), region = 28 }
  0x33   : > { %1029 = dma.done.wait (%p1259_p1), [#allocation3], 512   ;;  %p1260_p0 = pmov %p1259_p1 }
  0x34   : > { %p150_p5 = scmp.lt.s32.totalorder %s1096_s13, 1  ;;  %v1055_v0 = vmov 0   ;;  %v1056_v1 = vmov 0.0|0.0   ;;  %v163_v3 = vld [vmem:[#allocation2] sm:$0xff]  ;;  %v164_v4 = vld [vmem:[#allocation2 + $0x8] sm:$0xff]  ;;  %v165_v7 = vld [vmem:[#allocation2 + $0x10] sm:$0xff]  ;;  %v155_v36 = vlaneseq }
  0x35   : > { %1031 = vsyncadd (%p1260_p0), [#allocation3], 4294966784  ;;  %955 = vset.pattern.permute.xlu0 %v1055_v0  ;;  %872 = vmatprep.subr.bf16.mxu0 %v1056_v1  ;;  %v172_v5 = vand.u32 4294901760, %v163_v3  ;;  %v175_v6 = vand.u32 4294901760, %v164_v4  ;;  %v166_v8 = vld [vmem:[#allocation2 + $0x18] sm:$0xff]  ;;  %v178_v9 = vand.u32 4294901760, %v165_v7 }
  0x36   : > { %s151_s14 = scalar_select %p150_p5, %s1096_s13, 1  ;;  %854 = vmatprep.subr.bf16.mxu1 %v1056_v1  ;;  %v181_v10 = vand.u32 4294901760, %v166_v8  ;;  %vm1057_vm0 = vmmov 0   ;;  %v1058_v19 = vmov 0.0   ;;  %v156_v37 = vand.u32 127, %v155_v36 }
  0x37   : > { %v855_v11 = vpack.c.bf16 %v175_v6, %v172_v5  ;;  %v1165_v12 = vsub.f32 %v163_v3, %v172_v5  ;;  %v259_v13 = vsub.f32 %v164_v4, %v175_v6  ;;  %v1167_v14 = vsub.f32 %v165_v7, %v178_v9  ;;  %829 = vmatprep.mubr.msk.f32.mxu0 %vm1057_vm0, %v1058_v19  ;;  %s147_s23 = sand.u32 1, %s1042_s10   ;;  %s755_s25 = sshll.u32 %s1096_s13, 7 }
  0x38   : > { %s749_s16 = sshll.u32 %s151_s14, 3  ;;  %v1169_v15 = vsub.f32 %v166_v8, %v181_v10  ;;  %v858_v16 = vpack.c.bf16 %v181_v10, %v178_v9  ;;  %796 = vmatprep.mubr.msk.f32.mxu1 %vm1057_vm0, %v1058_v19  ;;  %vm167_vm1 = vcmask 261120   ;;  %s748_s24 = sshll.u32 %s147_s23, 3 }
  0x39   : > { %s153_s22 = scalar_lea.vmem %s1248_s0, %s749_s16  ;;  %874 = vmatpush3.bf16.msra.mxu0 %v855_v11  ;;  %856 = vmatpush3.bf16.msra.mxu1 %v855_v11  ;;  %v253_v17 = vand.u32 4294901760, %v1165_v12  ;;  %v260_v18 = vand.u32 4294901760, %v259_v13  ;;  %v267_v25 = vand.u32 4294901760, %v1167_v14  ;;  %v867_v34 = vpack.c.bf16 %v259_v13, %v1165_v12  ;;  %s149_s26 = scalar_lea.vmem [#allocation5], %s748_s24 }
  0x3a   : > { %v154_v2 = vld [vmem:[%s153_s22] sm:$0xff]  ;;  %875 = vmatprep.subr.bf16.mxu0 %v1056_v1  ;;  %857 = vmatprep.subr.bf16.mxu1 %v1056_v1  ;;  %v274_v26 = vand.u32 4294901760, %v1169_v15  ;;  %v870_v35 = vpack.c.bf16 %v1169_v15, %v1167_v14  ;;  %s671_s27 = sshll.u32 %s149_s26, 4  ;;  %s1205_s30 = scalar_lea.hbm %s1250_s2, %s755_s25  ;;  %s1207_s27 = int_to_ptr.vmem [resolvable:$true] %s671_s27 }
  0x3b   : > { %158 = vperm.xlu0 %955, %v154_v2   ;;  %v879_v20 = vpack.c.bf16 %v260_v18, %v253_v17  ;;  %v254_v21 = vsub.f32 %v1165_v12, %v253_v17  ;;  %v261_v22 = vsub.f32 %v259_v13, %v260_v18  ;;  %v268_v29 = vsub.f32 %v1167_v14, %v267_v25  ;;  %s658_s3 = scalar_lea.sflag [#allocation4], %s147_s23  ;;  %s984_s4 = scalar_lea.vmem %s1207_s27, 128 }
  0x3c   : > { %v882_v28 = vpack.c.bf16 %v274_v26, %v267_v25  ;;  %v275_v30 = vsub.f32 %v1169_v15, %v274_v26  ;;  %p985_p6 = scmp.ne.s32.totalorder %s1207_s27, %s984_s4  ;;  %p1261_p9 = scmp.ne.s32.totalorder %s1254_s19, 0 }
  0x3d   : > { %877 = vmatpush3.bf16.msra.mxu0 %v858_v16  ;;  %859 = vmatpush3.bf16.msra.mxu1 %v858_v16  ;;  %v255_v23 = vand.u32 4294901760, %v254_v21  ;;  %v262_v24 = vand.u32 4294901760, %v261_v22  ;;  %v269_v31 = vand.u32 4294901760, %v268_v29  ;;  %s1059_s13 = smov [#allocation5]  }
  0x3e   : > { %878 = vmatprep.subr.bf16.mxu0 %v1056_v1  ;;  %860 = vmatprep.subr.bf16.mxu1 %v1056_v1  ;;  %v276_v32 = vand.u32 4294901760, %v275_v30  ;;  %p986_p10 = pnand %p985_p6, %p1261_p9  ;;  %s988_s5 = sshll.u32 %s1059_s13, 4  ;;  %s989_s5 = int_to_ptr.vmem [resolvable:$false] %s988_s5 }
  0x3f   : > { %v861_v27 = vpack.c.bf16 %v262_v24, %v255_v23  ;;  %s990_s6 = scalar_lea.vmem %s989_s5, 256  ;;  %p991_p2 = scmp.lt.s32.totalorder %s1207_s27, %s989_s5 }
  0x40   : > { %v864_v33 = vpack.c.bf16 %v276_v32, %v269_v31  ;;  %p987_p12 = pneg %p986_p10  ;;  %p992_p3 = scmp.lt.s32.totalorder %s990_s6, %s984_s4 }
  0x42   : > { %p993_p4 = por %p992_p3, %p991_p2 }
  0x44   : > { %p994_p7 = pnand %p993_p4, %p987_p12 }
  0xba   : > { %v159_v38 = vpop.permute.xlu0 %158 }
  0xbb   : > { %vm160_vm2 = vcmp.eq.s32.totalorder %v159_v38, %v156_v37 }
  0xbc   : > { %v750_v39 = vsel %vm160_vm2, 1.0, %v1058_v19 }
  0xbd   : > { %v169_v40 = vsel %vm167_vm1, %v750_v39, 0 }
  0xbe   : > { %v241_v41 = vsub.f32 %v169_v40, %v169_v40 }
  0xc0   : > { %v242_v42 = vand.u32 4294901760, %v241_v41 }
  0xc2   : > { %830 = vmatmul.mubr.f32.vlgmr.msra.gmra.mrb[0].mxu0 %v242_v42  ;;  %v243_v43 = vsub.f32 %v241_v41, %v242_v42 }
  0xc3   : > { %880 = vmatpush3.bf16.msra.mxu0 %v879_v20  ;;  %840 = vmatprep.mubr.msk.f32.mxu0 %vm1057_vm0, %v1058_v19 }
  0xc4   : > { %v244_v44 = vand.u32 4294901760, %v243_v43  ;;  %881 = vmatprep.subr.bf16.mxu0 %v1056_v1 }
  0xc6   : > { %797 = vmatmul.mubr.f32.vlgmr.msra.gmra.mrb[0].mxu1 %v244_v44 }
  0xc7   : > { %862 = vmatpush3.bf16.msra.mxu1 %v861_v27  ;;  %883 = vmatpush3.bf16.msra.mxu0 %v882_v28 }
  0xc8   : > { %863 = vmatprep.subr.bf16.mxu1 %v1056_v1  ;;  %884 = vmatprep.subr.bf16.mxu0 %v1056_v1 }
  0xc9   : > { %807 = vmatprep.mubr.msk.f32.mxu1 %vm1057_vm0, %v1058_v19 }
  0xca   : > { %841 = vmatmul.mubr.msk.f32.vlgmr.msra.gmra.mrb[0].mxu0 %vm167_vm1, %v750_v39 }
  0xcb   : > { %865 = vmatpush3.bf16.msra.mxu1 %v864_v33  ;;  %886 = vmatpush3.bf16.msra.mxu0 %v855_v11 }
  0xcc   : > { %866 = vmatprep.subr.bf16.mxu1 %v1056_v1  ;;  %887 = vmatprep.subr.bf16.mxu0 %v1056_v1 }
  0xcd   : > { %851 = vmatprep.mubr.msk.f32.mxu0 %vm1057_vm0, %v1058_v19 }
  0xce   : > { %808 = vmatmul.mubr.msk.f32.vlgmr.msra.gmra.mrb[0].mxu1 %vm167_vm1, %v750_v39 }
  0xcf   : > { %868 = vmatpush3.bf16.msra.mxu1 %v867_v34  ;;  %889 = vmatpush3.bf16.msra.mxu0 %v858_v16 }
  0xd0   : > { %869 = vmatprep.subr.bf16.mxu1 %v1056_v1  ;;  %818 = vmatprep.mubr.msk.f32.mxu1 %vm1057_vm0, %v1058_v19 }
  0xd2   : > { %852 = vmatmul.mubr.msk.f32.vlgmr.msra.gmra.mrb[0].mxu0 %vm167_vm1, %v750_v39 }
  0xd3   : > { %871 = vmatpush3.bf16.msra.mxu1 %v870_v35 }
  0xd6   : > { %819 = vmatmul.mubr.f32.vlgmr.msra.gmra.mrb[0].mxu1 %v241_v41 }
 0x1a5   : > { %v652_v45 = vpop.f32.mrb[0].mxu0 }
 0x1a6   : > { %v853_v46 = vpop.f32.mrb[1].mxu0 }
 0x1a9   : > { %v417_v47 = vpop.f32.mrb[0].mxu1 }
 0x1aa   : > { %v890_v48 = vadd.f32 %v652_v45, %v417_v47  ;;  %v820_v49 = vpop.f32.mrb[1].mxu1 }
 0x1ac   : > { %656 = vst.msk [vmem:[%s149_s26] sm:$0xff] %vm167_vm1, %v890_v48 }
 0x1ad   : > { %997 = shalt.err (!%p994_p7)
}
 0x1ae   : > { %s998_s7 = scalar_lea.hbm %s1205_s30, 128  ;;  %s1002_s16 = scalar_lea.hbm %s1250_s2, 256 }
 0x1af   : > { %p999_p8 = scmp.ne.s32.totalorder %s1205_s30, %s998_s7  ;;  %p1003_p1 = scmp.lt.u32.totalorder %s1205_s30, %s1250_s2 }
 0x1b0   : > { %p1004_p0 = scmp.lt.u32.totalorder %s1002_s16, %s998_s7  ;;  %p1006_p6 = scmp.lt.u32.totalorder %s998_s7, %s1205_s30 }
 0x1b1   : > { %p1000_p11 = pnand %p999_p8, %p1261_p9 }
 0x1b2   : > { %p1005_p5 = por %p1004_p0, %p1003_p1 }
 0x1b3   : > { %p1001_p13 = pneg %p1000_p11 }
 0x1b4   : > { %p1007_p10 = por %p1006_p6, %p1005_p5 }
 0x1b6   : > { %p1008_p12 = pnand %p1007_p10, %p1001_p13 }
 0x1b8   : > { %1011 = shalt.err (!%p1008_p12)
}
 0x1b9   : > { %903 = dma.vmem_to_hbm [thread:$0]  (%p1261_p9), %s1207_s27, 128, %s1205_s30, %s658_s3  }
 0x1ba PF: > { %p915_p2 = scmp.ge.s32.totalorder %s1050_s12, 2  ;;  %s683_s22 = sand.u32 1, %s1038_s9  }
 0x1bb   : > { %p1262_p3 = scmp.ne.s32.totalorder %s1255_s20, 0  ;;  %s684_s23 = scalar_lea.sflag [#allocation4], %s683_s22 }
 0x1bd   : > { %p910_p4 = pnand %p915_p2, %p1262_p3 }
 0x1bf   : > { %1033 = dma.done.wait (!%p910_p4), %s684_s23, 128  }
 0x1c0   : > { %1035 = vsyncadd (!%p910_p4), %s684_s23, 4294967168  ;;  %p13_p7 = scmp.ge.s32.totalorder %s1100_s15, 4   ;;  %s1263_s9 = smov %s1042_s10 }
 0x1c1   : > { %s1264_s10 = smov %s1046_s11  ;;  %s1265_s11 = smov %s1111_s18 }
 0x1c2   : > { %s1266_s12 = smov %s1100_s15  ;;  %15 = sbr.rel (!%p13_p7) target bundleno = 4 (0x4), region = 68 }
 0x1c9   :  { %689 = vsyncpa [#allocation3], 1 }
 0x1ca   :  { %691 = vsyncpa [#allocation3 + $0x1], 1 }
 0x1cb   :  { %692 = vsyncpa [#allocation4], 1 }
 0x1cc   :  { %694 = vsyncpa [#allocation4 + $0x1], 1 }

</bundles_post_ra>
